<compile_context>
chip_gen: v7x
topology: tpu7x:2x2x1
jax: 0.10.0
libtpu: 0.0.40
codegen_flags: <defaults>
</compile_context>

<pallas_src>
import functools

import jax
import jax.numpy as jnp
import numpy as np
from jax.experimental import pallas as pl
from jax.experimental.pallas import tpu as pltpu


def _round_up(x, m):
    return ((x + m - 1) // m) * m


def _mlp_kernel(x_ref, w1t_ref, b1_ref, w2t_ref, b2_ref, o_ref):
    # x_ref   : (C_in, tL)  channel-major tile, L positions on the lane axis
    # w1t_ref : (H, C_in)   resident (constant index_map)
    # b1_ref  : (H, 1)      f32, broadcasts along lanes
    # w2t_ref : (C_out, H)  resident
    # b2_ref  : (C_out, 1)  f32
    # o_ref   : (C_out, tL) lane-dense output tile
    # Cast in-kernel (free VPU work) so the wrapper never rewrites x in HBM.
    x = x_ref[...].astype(w1t_ref.dtype)
    h = jnp.dot(w1t_ref[...], x, preferred_element_type=jnp.float32) + b1_ref[...]
    h = jnp.maximum(h, 0.0)                      # hidden ReLU
    h = h.astype(w2t_ref.dtype)                  # back to compute dtype (bf16 path)
    y = jnp.dot(w2t_ref[...], h, preferred_element_type=jnp.float32) + b2_ref[...]
    y = jnp.maximum(y, 0.0)                      # output_use_activation=True
    o_ref[...] = y.astype(o_ref.dtype)


@functools.partial(jax.jit, static_argnames=("tl", "use_bf16"))
def generic_mlp_forward(x_ncl, w1, b1, w2, b2, *, tl=1024, use_bf16=False):
    """Fused 1x1-Conv MLP on NCL input.

    x_ncl: (N, C_in, L)          (PyTorch Conv1d layout, NOT re-laid-out)
    w1:    (C_in, H)   == torch conv1.weight[:, :, 0].T
    b1:    (H,)        == torch conv1.bias
    w2:    (H, C_out)  == torch conv2.weight[:, :, 0].T
    b2:    (C_out,)    == torch conv2.bias
    use_bf16: run both matmuls in bf16 with f32 accumulation (recommended on
      v6e/v7x; x stays in its HBM dtype, cast happens inside the kernel).
    Returns (N, C_out, L).
    """
    N, C_in, L = x_ncl.shape
    H = w1.shape[1]
    C_out = w2.shape[1]

    # Lane tile: forced multiple of 128, capped so tiny inputs do not over-tile.
    tl_eff = max(128, min(_round_up(tl, 128), _round_up(L, 128)))
    num_l_tiles = pl.cdiv(L, tl_eff)
    # v7x megacore: make sure both TensorCores get work when N == 1.
    if N * num_l_tiles < 2 and L > 128:
        tl_eff = max(128, _round_up(pl.cdiv(L, 2), 128))
        num_l_tiles = pl.cdiv(L, tl_eff)

    out_dtype = x_ncl.dtype
    compute_dtype = jnp.bfloat16 if use_bf16 else x_ncl.dtype

    # Stationary operands, transposed once so the kernel's output is (C_out, tL).
    w1t = jnp.transpose(w1).astype(compute_dtype)            # (H, C_in)
    w2t = jnp.transpose(w2).astype(compute_dtype)            # (C_out, H)
    b1c = jnp.reshape(b1, (H, 1)).astype(jnp.float32)        # (H, 1)
    b2c = jnp.reshape(b2, (C_out, 1)).astype(jnp.float32)    # (C_out, 1)

    grid = (N, num_l_tiles)

    x_item = jnp.dtype(x_ncl.dtype).itemsize
    w_item = jnp.dtype(compute_dtype).itemsize
    o_item = jnp.dtype(out_dtype).itemsize

    flops = 2 * N * L * (C_in * H + H * C_out)
    bytes_accessed = (
        N * C_in * L * x_item                                 # x read
        + N * C_out * L * o_item                              # out write
        + (H * C_in + C_out * H) * w_item                     # weights
        + (H + C_out) * 4                                     # biases
    )

    # Conservative VMEM budget (double-buffered activation tiles + resident
    # weights + f32 intermediates); only raise the limit when we need it.
    vmem_bytes = (
        2 * C_in * tl_eff * x_item
        + 2 * C_out * tl_eff * o_item
        + 2 * (H * C_in + C_out * H) * w_item
        + 2 * (H + C_out) * 4
        + H * tl_eff * (4 + w_item)                           # f32 h + cast copy
        + C_out * tl_eff * 4                                  # f32 y
    )
    compiler_kwargs = {}
    if vmem_bytes > 30 * 1024 * 1024:
        # Cap below v7x's 64 MiB physical; v5e/v6e have more headroom.
        compiler_kwargs["vmem_limit_bytes"] = min(
            int(vmem_bytes * 1.25), 60 * 1024 * 1024)

    out = pl.pallas_call(
        _mlp_kernel,
        out_shape=jax.ShapeDtypeStruct((N, C_out, L), out_dtype),
        grid_spec=pltpu.PrefetchScalarGridSpec(
            num_scalar_prefetch=0,
            grid=grid,
            in_specs=[
                # x: (1, C_in, tL) block, batch dim squeezed out of the kernel
                # ref.  Ragged last L tile is handled by Pallas (masked edge).
                pl.BlockSpec((None, C_in, tl_eff), lambda n, j: (n, 0, j)),
                # Stationary weights / biases: constant index_map -> resident.
                pl.BlockSpec((H, C_in), lambda n, j: (0, 0)),
                pl.BlockSpec((H, 1), lambda n, j: (0, 0)),
                pl.BlockSpec((C_out, H), lambda n, j: (0, 0)),
                pl.BlockSpec((C_out, 1), lambda n, j: (0, 0)),
            ],
            out_specs=pl.BlockSpec((None, C_out, tl_eff), lambda n, j: (n, 0, j)),
        ),
        compiler_params=pltpu.CompilerParams(
            dimension_semantics=("parallel", "parallel"),
            **compiler_kwargs,
        ),
        cost_estimate=pl.CostEstimate(
            flops=flops, transcendentals=0, bytes_accessed=bytes_accessed),
    )(x_ncl, w1t, b1c, w2t, b2c)

    return out


def _reference(x_ncl, w1, b1, w2, b2):
    # Pure-JAX reference of Conv1d(k=1)+ReLU twice, NCL layout, f32.
    x = jnp.transpose(x_ncl, (0, 2, 1))              # (N, L, C_in)
    h = jnp.maximum(x @ w1 + b1, 0.0)
    y = jnp.maximum(h @ w2 + b2, 0.0)
    return jnp.transpose(y, (0, 2, 1))               # (N, C_out, L)


def _make_params(key, C_in, H, C_out):
    kw1, kb1, kw2, kb2 = jax.random.split(key, 4)
    lim1 = float(np.sqrt(6.0 / (C_in + H)))
    lim2 = float(np.sqrt(6.0 / (H + C_out)))
    w1 = jax.random.uniform(kw1, (C_in, H), jnp.float32, -lim1, lim1)
    b1 = jax.random.uniform(kb1, (H,), jnp.float32, -0.1, 0.1)
    w2 = jax.random.uniform(kw2, (H, C_out), jnp.float32, -lim2, lim2)
    b2 = jax.random.uniform(kb2, (C_out,), jnp.float32, -0.1, 0.1)
    return w1, b1, w2, b2


if __name__ == "__main__":
    key = jax.random.PRNGKey(0)
    kx, kx2, kp = jax.random.split(key, 3)

    # Small shapes: batch=2, in channels=4, hidden=32, out channels=4, length=16.
    N, C_in, H, C_out, L = 2, 4, 32, 4, 16
    w1, b1, w2, b2 = _make_params(kp, C_in, H, C_out)

    x = jax.random.normal(kx, (N, C_in, L), dtype=jnp.float32)
    ref = _reference(x, w1, b1, w2, b2)

    # f32 path (default): exercises the ragged (L=16 < 128) masked store.
    out = generic_mlp_forward(x, w1, b1, w2, b2)
    out = jax.block_until_ready(out)
    assert out.shape == (N, C_out, L)
    np.testing.assert_allclose(np.asarray(out), np.asarray(ref), rtol=1e-5, atol=1e-5)

    # bf16 compute / f32-accumulate path (v6e/v7x optimization), in-kernel cast.
    out_bf16 = generic_mlp_forward(x, w1, b1, w2, b2, use_bf16=True)
    out_bf16 = jax.block_until_ready(out_bf16)
    np.testing.assert_allclose(np.asarray(out_bf16), np.asarray(ref),
                               rtol=3e-2, atol=3e-2)

    # N=1 with a non-multiple-of-128 length: exercises the no-pad ragged edge
    # plus the megacore tile split (two lane tiles, no wrapper pad/slice).
    L2 = 300
    x2 = jax.random.normal(kx2, (1, C_in, L2), dtype=jnp.float32)
    ref2 = _reference(x2, w1, b1, w2, b2)
    out2 = generic_mlp_forward(x2, w1, b1, w2, b2)
    out2 = jax.block_until_ready(out2)
    assert out2.shape == (1, C_out, L2)
    np.testing.assert_allclose(np.asarray(out2), np.asarray(ref2),
                               rtol=1e-5, atol=1e-5)

    print("KERNEL_OK")
</pallas_src>

<mosaic_0001>
module attributes {stable_mosaic.version = 11 : i64} {
  func.func @_mlp_kernel(%arg0: i32, %arg1: i32, %arg2: memref<1x4x128xf32, #tpu.memory_space<vmem>>, %arg3: memref<32x4xf32, #tpu.memory_space<vmem>>, %arg4: memref<32x1xf32, #tpu.memory_space<vmem>>, %arg5: memref<4x32xf32, #tpu.memory_space<vmem>>, %arg6: memref<4x1xf32, #tpu.memory_space<vmem>>, %arg7: memref<1x4x128xf32, #tpu.memory_space<vmem>>) attributes {dimension_semantics = [#tpu.dimension_semantics<parallel>, #tpu.dimension_semantics<parallel>], iteration_bounds = array<i64: 2, 1>, scalar_prefetch = 0 : i64, scratch_operands = 0 : i64, tpu.core_type = #tpu.core_type<tc>, window_params = [{transform_indices = @transform_0, window_bounds = array<i64: 1, 4, 128>}, {pipeline_mode = #tpu.pipeline_mode<synchronous>, transform_indices = @transform_1, window_bounds = array<i64: 32, 4>}, {pipeline_mode = #tpu.pipeline_mode<synchronous>, transform_indices = @transform_2, window_bounds = array<i64: 32, 1>}, {pipeline_mode = #tpu.pipeline_mode<synchronous>, transform_indices = @transform_3, window_bounds = array<i64: 4, 32>}, {pipeline_mode = #tpu.pipeline_mode<synchronous>, transform_indices = @transform_4, window_bounds = array<i64: 4, 1>}, {transform_indices = @transform_5, window_bounds = array<i64: 1, 4, 128>}]} {
    %c0 = arith.constant 0 : index
    %c0_0 = arith.constant 0 : index
    %c0_1 = arith.constant 0 : index
    %0 = vector.load %arg2[%c0, %c0_0, %c0_1] : memref<1x4x128xf32, #tpu.memory_space<vmem>>, vector<1x4x128xf32>
    %1 = vector.shape_cast %0 : vector<1x4x128xf32> to vector<4x128xf32>
    %c0_2 = arith.constant 0 : index
    %c0_3 = arith.constant 0 : index
    %2 = vector.load %arg3[%c0_2, %c0_3] : memref<32x4xf32, #tpu.memory_space<vmem>>, vector<32x4xf32>
    %cst = arith.constant dense<0.000000e+00> : vector<32x128xf32>
    %3 = tpu.matmul %2, %1, %cst {dimension_numbers = #tpu.dot_dimension_numbers<[1], [0], [0], [1], [0, 0, 1, 1], [], []>} : vector<32x4xf32>, vector<4x128xf32>, vector<32x128xf32> -> vector<32x128xf32>
    %c0_4 = arith.constant 0 : index
    %c0_5 = arith.constant 0 : index
    %4 = vector.load %arg4[%c0_4, %c0_5] : memref<32x1xf32, #tpu.memory_space<vmem>>, vector<32x1xf32>
    %5 = vector.broadcast %4 : vector<32x1xf32> to vector<32x128xf32>
    %6 = arith.addf %3, %5 : vector<32x128xf32>
    %cst_6 = arith.constant 0.000000e+00 : f32
    %7 = vector.broadcast %cst_6 : f32 to vector<32x128xf32>
    %8 = arith.maximumf %6, %7 : vector<32x128xf32>
    %c0_7 = arith.constant 0 : index
    %c0_8 = arith.constant 0 : index
    %9 = vector.load %arg5[%c0_7, %c0_8] : memref<4x32xf32, #tpu.memory_space<vmem>>, vector<4x32xf32>
    %cst_9 = arith.constant dense<0.000000e+00> : vector<4x128xf32>
    %10 = tpu.matmul %9, %8, %cst_9 {dimension_numbers = #tpu.dot_dimension_numbers<[1], [0], [0], [1], [0, 0, 1, 1], [], []>} : vector<4x32xf32>, vector<32x128xf32>, vector<4x128xf32> -> vector<4x128xf32>
    %c0_10 = arith.constant 0 : index
    %c0_11 = arith.constant 0 : index
    %11 = vector.load %arg6[%c0_10, %c0_11] : memref<4x1xf32, #tpu.memory_space<vmem>>, vector<4x1xf32>
    %12 = vector.broadcast %11 : vector<4x1xf32> to vector<4x128xf32>
    %13 = arith.addf %10, %12 : vector<4x128xf32>
    %cst_12 = arith.constant 0.000000e+00 : f32
    %14 = vector.broadcast %cst_12 : f32 to vector<4x128xf32>
    %15 = arith.maximumf %13, %14 : vector<4x128xf32>
    %c0_13 = arith.constant 0 : index
    %c0_14 = arith.constant 0 : index
    %c0_15 = arith.constant 0 : index
    %16 = vector.load %arg7[%c0_13, %c0_14, %c0_15] : memref<1x4x128xf32, #tpu.memory_space<vmem>>, vector<1x4x128xf32>
    %17 = vector.shape_cast %16 : vector<1x4x128xf32> to vector<4x128xf32>
    %18 = vector.shape_cast %15 : vector<4x128xf32> to vector<1x4x128xf32>
    tpu.vector_store %arg7[%c0_13, %c0_14, %c0_15], %18 {strides = array<i32>} : memref<1x4x128xf32, #tpu.memory_space<vmem>>, vector<1x4x128xf32>,
    return
  }
  func.func @transform_0(%arg0: i32, %arg1: i32) -> (i32, i32, i32) {
    %c0_i32 = arith.constant 0 : i32
    %c0_i32_0 = arith.constant 0 : i32
    return %arg0, %c0_i32, %arg1 : i32, i32, i32
  }
  func.func @transform_1(%arg0: i32, %arg1: i32) -> (i32, i32) {
    %c0_i32 = arith.constant 0 : i32
    %c0_i32_0 = arith.constant 0 : i32
    %c0_i32_1 = arith.constant 0 : i32
    return %c0_i32, %c0_i32_0 : i32, i32
  }
  func.func @transform_2(%arg0: i32, %arg1: i32) -> (i32, i32) {
    %c0_i32 = arith.constant 0 : i32
    %c0_i32_0 = arith.constant 0 : i32
    %c0_i32_1 = arith.constant 0 : i32
    return %c0_i32, %c0_i32_0 : i32, i32
  }
  func.func @transform_3(%arg0: i32, %arg1: i32) -> (i32, i32) {
    %c0_i32 = arith.constant 0 : i32
    %c0_i32_0 = arith.constant 0 : i32
    %c0_i32_1 = arith.constant 0 : i32
    return %c0_i32, %c0_i32_0 : i32, i32
  }
  func.func @transform_4(%arg0: i32, %arg1: i32) -> (i32, i32) {
    %c0_i32 = arith.constant 0 : i32
    %c0_i32_0 = arith.constant 0 : i32
    %c0_i32_1 = arith.constant 0 : i32
    return %c0_i32, %c0_i32_0 : i32, i32
  }
  func.func @transform_5(%arg0: i32, %arg1: i32) -> (i32, i32, i32) {
    %c0_i32 = arith.constant 0 : i32
    %c0_i32_0 = arith.constant 0 : i32
    return %arg0, %c0_i32, %arg1 : i32, i32, i32
  }
}

</mosaic_0001>

<bundles_post_ra>
// kernel: generic_mlp_forward.1
= control target key start
LH: loop header
LB: loop body
LE: loop exit
PB: predicated region body
PF: predicated region fallthrough
CT: control target
= control target key end

     0   :  { %10 = vsyncpa [#allocation3], 0  ;;  %s923_s0 = inlined_call_operand.vmem [shape: f32[2,4,16], index: 0, kind: input, shape index: {}]   ;;  %s924_s1 = inlined_call_operand.vmem [shape: f32[32,4], index: 1, kind: input, shape index: {}]   ;;  %s925_s2 = inlined_call_operand.vmem [shape: f32[32,1], index: 2, kind: input, shape index: {}]   ;;  %s926_s3 = inlined_call_operand.vmem [shape: f32[4,32], index: 3, kind: input, shape index: {}]   ;;  %s927_s4 = inlined_call_operand.vmem [shape: f32[4,1], index: 4, kind: input, shape index: {}]   ;;  %s928_s5 = inlined_call_operand.hbm [shape: f32[2,4,16], index: 5, kind: output, shape index: {}]  }
   0x1   :  { %12 = vsyncpa [#allocation3 + $0x1], 0  ;;  %s777_s18 = smov 0   ;;  %s779_s19 = smov 0  }
   0x2   :  { %s781_s20 = smov 0   ;;  %s783_s21 = smov 0  }
   0x3   :  { %s785_s22 = smov 0   ;;  %s787_s23 = smov 0  }
   0x4 LB: > { %s549_s24 = sadd.s32 4294967295, %s740_s23   ;;  %s550_s25 = sadd.s32 4294967294, %s740_s23   ;;  %s740_s23 = sphi %s787_s23, %s18_s23   ;;  %s736_s22 = sphi %s785_s22, %s935_s22   ;;  %s732_s21 = sphi %s783_s21, %s934_s21   ;;  %s728_s20 = sphi %s781_s20, %s933_s20   ;;  %s724_s19 = sphi %s779_s19, %s932_s19   ;;  %s720_s18 = sphi %s777_s18, %s931_s18  }
   0x5   : > { %s30_s26 = sadd.s32 1, %s736_s22  ;;  %s151_s27 = sadd.s32 1, %s728_s20 }
   0x6   : > { %p32_p0 = scmp.ge.s32.totalorder %s30_s26, 2  ;;  %p161_p1 = scmp.ne.s32.totalorder %s728_s20, %s724_s19 }
   0x7   : > { %p162_p2 = scmp.eq.s32.totalorder %s549_s24, 1  ;;  %p167_p3 = scmp.ne.s32.totalorder %s724_s19, %s720_s18 }
   0x8   : > { %s937_s26 = smov (%p32_p0, %s30_s26), 0  ;;  %p168_p5 = scmp.eq.s32.totalorder %s550_s25, 1 }
   0x9   : > { %p817_p4 = por %p162_p2, %p161_p1  ;;  %s146_s29 = ssub.s32 %s736_s22, %s937_s26 }
   0xa   : > { %p553_p6 = scmp.ge.s32.totalorder %s740_s23, 1  ;;  %p149_p7 = scmp.eq.s32.totalorder %s146_s29, 0 }
   0xb   : > { %p824_p8 = por %p168_p5, %p167_p3  ;;  %p208_p9 = scmp.lt.s32.totalorder %s740_s23, 3 }
   0xc   : > { %s830_s6 = scalar_select %p149_p7, %s728_s20, %s151_s27  }
   0xd   : > { %p209_p10 = pnand %p553_p6, %p208_p9 }
   0xe   : > { %p238_p11 = scmp.lt.s32.totalorder (!%p209_p10), %s732_s21, 1  ;;  %v246_v0 = vld [vmem:[%s924_s1] sm:$0xff] (!%p209_p10)  ;;  %vm274_vm0 = vcmask (!%p209_p10), 31744   ;;  %v742_v2 = vmov (!%p209_p10), 0   ;;  %v252_v3 = vld [vmem:[%s925_s2 + $0x10] sm:$0xff] (!%p209_p10)  ;;  %vm287_vm1 = vcmask (!%p209_p10), 1043456  }
   0xf   : > { %212 = sbr.rel (%p209_p10) target bundleno = 485 (0x1e5), region = 40  ;;  %578 = vmatprep.mubr.msk.f32.mxu0 (!%p209_p10), %vm274_vm0, %v246_v0  ;;  %v250_v1 = vld [vmem:[%s925_s2] sm:$0xff] (!%p209_p10)  ;;  %660 = vset.pattern.permute.xlu0 (!%p209_p10), %v742_v2  ;;  %v251_v4 = vld [vmem:[%s925_s2 + $0x8] sm:$0xff] (!%p209_p10)  ;;  %v253_v5 = vld [vmem:[%s925_s2 + $0x18] sm:$0xff] (!%p209_p10)  ;;  %v743_v11 = vmov (!%p209_p10), 0.0|0.0   ;;  %vm744_vm2 = vmmov (!%p209_p10), 0  }
  0x10   : > { %661 = vset.pattern.permute.xlu1 (!%p209_p10), %v742_v2  ;;  %256 = vperm.xlu0 (!%p209_p10), %660, %v250_v1   ;;  %v247_v7 = vld [vmem:[%s924_s1 + $0x8] sm:$0xff] (!%p209_p10)  ;;  %v248_v8 = vld [vmem:[%s924_s1 + $0x10] sm:$0xff] (!%p209_p10)  ;;  %v381_v9 = vld [vmem:[%s927_s4] sm:$0xf] (!%p209_p10)  ;;  %v745_v12 = vmov (!%p209_p10), 0.0   ;;  %vm387_vm3 = vcmask (!%p209_p10), 261120  }
  0x11   : > { %266 = vperm.xlu1 (!%p209_p10), %661, %v252_v3   ;;  %v249_v10 = vld [vmem:[%s924_s1 + $0x18] sm:$0xff] (!%p209_p10)  ;;  %595 = vmatprep.subr.bf16.mxu1 (!%p209_p10), %v743_v11  ;;  %v380_v31 = vld [vmem:[%s926_s3] sm:$0xf] (!%p209_p10)  ;;  %s235_s17 = sand.u32 (!%p209_p10), 1, %s724_s19  }
  0x12   : > { %592 = vmatprep.mubr.msk.f32.mxu1 (!%p209_p10), %vm744_vm2, %v745_v12  ;;  %s554_s24 = sshll.u32 (!%p209_p10), %s235_s17, 2  ;;  %s464_s10 = scalar_lea.sflag (!%p209_p10), [#allocation3], %s235_s17 }
  0x13   : > { %s237_s27 = scalar_lea.vmem (!%p209_p10), [#allocation2], %s554_s24 }
  0x14   : > { %261 = vperm.xlu0 (!%p209_p10), %660, %v251_v4   ;;  %s478_s29 = sshll.u32 (!%p209_p10), %s237_s27, 4  ;;  %s878_s29 = int_to_ptr.vmem [resolvable:$true] %s478_s29 }
  0x15   : > { %271 = vperm.xlu1 (!%p209_p10), %661, %v253_v5  }
  0x16   : > { %s239_s11 = scalar_select %p238_p11, %s732_s21, 1 }
  0x18   : > { %s555_s14 = sshll.u32 %s239_s11, 2  ;;  %384 = vperm.xlu0 %660, %v381_v9   ;;  %s662_s11 = scalar_lea.vmem %s878_s29, 64 }
  0x19   : > { %s244_s25 = scalar_lea.vmem %s923_s0, %s555_s14  ;;  %p663_p12 = scmp.ne.s32.totalorder %s878_s29, %s662_s11 }
  0x1a   : > { %v245_v6 = vld [vmem:[%s244_s25] sm:$0xf]  ;;  %s563_s25 = sshll.u32 %s732_s21, 6  ;;  %s746_s21 = smov [#allocation2]  }
  0x1b   : > { %576 = vmatprep.subr.msk.mxu0 %vm287_vm1, %v245_v6  ;;  %s876_s9 = scalar_lea.hbm %s928_s5, %s563_s25  ;;  %p664_p13 = pnand %p663_p12, %p817_p4 }
  0x1c   : > { %577 = vmatpush3.msk.msra.mxu0 %vm287_vm1, %v245_v6  ;;  %s666_s12 = sshll.u32 %s746_s21, 4  ;;  %s667_s12 = int_to_ptr.vmem [resolvable:$false] %s666_s12 }
  0x1d   : > { %579 = vmatmul.mubr.msk.f32.vlgmr.msra.gmra.mrb[0].mxu0 %vm274_vm0, %v247_v7  ;;  %p665_p0 = pneg %p664_p13  ;;  %s668_s13 = scalar_lea.vmem %s667_s12, 128 }
  0x1e   : > { %581 = vmatprep.mubr.msk.f32.mxu0 %vm274_vm0, %v248_v8  ;;  %p669_p1 = scmp.lt.s32.totalorder %s878_s29, %s667_s12  ;;  %p670_p2 = scmp.lt.s32.totalorder %s668_s13, %s662_s11 }
  0x20   : > { %p671_p3 = por %p670_p2, %p669_p1 }
  0x21   : > { %582 = vmatmul.mubr.msk.f32.gmra.mrb[2].mxu0 %vm274_vm0, %v249_v10 }
  0x22   : > { %p672_p5 = pnand %p671_p3, %p665_p0 }
  0x8f   : > { %v257_v13 = vpop.permute.xlu0 %256 }
  0x90   : > { %v267_v14 = vpop.permute.xlu1 %266 }
  0x93   : > { %v262_v15 = vpop.permute.xlu0 %261 }
  0x94   : > { %v272_v21 = vpop.permute.xlu1 %271 }
  0x97   : > { %v385_v32 = vpop.permute.xlu0 %384 }
  0xf0   : > { %v580_v16 = vpop.f32.mrb[0].mxu0 }
  0xf1   : > { %v363_v17 = vadd.f32 %v580_v16, %v262_v15  ;;  %v357_v18 = vpop.f32.mrb[1].mxu0 }
  0xf2   : > { %v358_v19 = vadd.f32 %v357_v18, %v257_v13 }
  0xf3   : > { %v377_v20 = vmax.f32 %v363_v17, 0.0 }
  0xf4   : > { %v376_v22 = vmax.f32 %v358_v19, 0.0  ;;  %v583_v23 = vpop.f32.mrb[2].mxu0 }
  0xf5   : > { %v373_v24 = vadd.f32 %v583_v23, %v272_v21  ;;  %v367_v25 = vpop.f32.mrb[3].mxu0 }
  0xf6   : > { %v368_v26 = vadd.f32 %v367_v25, %v267_v14  ;;  %v596_v27 = vpack.c.bf16 %v377_v20, %v376_v22 }
  0xf7   : > { %v379_v28 = vmax.f32 %v373_v24, 0.0 }
  0xf8   : > { %v378_v29 = vmax.f32 %v368_v26, 0.0  ;;  %597 = vmatpush3.bf16.msra.mxu1 %v596_v27 }
  0xf9   : > { %598 = vmatprep.subr.bf16.mxu1 %v743_v11 }
  0xfa   : > { %v599_v30 = vpack.c.bf16 %v379_v28, %v378_v29 }
  0xfc   : > { %600 = vmatpush3.bf16.msra.mxu1 %v599_v30 }
  0xff   : > { %593 = vmatmul.mubr.msk.f32.vlgmr.msra.gmra.mrb[0].mxu1 %vm387_vm3, %v380_v31 }
 0x1d2   : > { %v457_v33 = vpop.f32.mrb[0].mxu1 }
 0x1d3   : > { %v458_v34 = vadd.f32 %v457_v33, %v385_v32  ;;  %v594_v35 = vpop.f32.mrb[1].mxu1 }
 0x1d5   : > { %v461_v36 = vmax.f32 %v458_v34, 0.0 }
 0x1d7   : > { %462 = vst [vmem:[%s237_s27] sm:$0xf] %v461_v36 }
 0x1d8   : > { %675 = shalt.err (!%p672_p5)
}
 0x1d9   : > { %s676_s14 = scalar_lea.hbm %s876_s9, 64  ;;  %s680_s17 = scalar_lea.hbm %s928_s5, 128 }
 0x1da   : > { %p677_p6 = scmp.ne.s32.totalorder %s876_s9, %s676_s14  ;;  %p681_p10 = scmp.lt.u32.totalorder %s876_s9, %s928_s5 }
 0x1db   : > { %p682_p11 = scmp.lt.u32.totalorder %s680_s17, %s676_s14  ;;  %p684_p13 = scmp.lt.u32.totalorder %s676_s14, %s876_s9 }
 0x1dc   : > { %p678_p7 = pnand %p677_p6, %p817_p4 }
 0x1dd   : > { %p683_p12 = por %p682_p11, %p681_p10 }
 0x1de   : > { %p679_p9 = pneg %p678_p7 }
 0x1df   : > { %p685_p0 = por %p684_p13, %p683_p12 }
 0x1e1   : > { %p686_p1 = pnand %p685_p0, %p679_p9 }
 0x1e3   : > { %689 = shalt.err (!%p686_p1)
}
 0x1e4   : > { %601 = dma.vmem_to_hbm [thread:$0]  (%p817_p4), %s878_s29, 64, %s876_s9, %s464_s10  }
 0x1e5 PF: > { %p607_p2 = scmp.ge.s32.totalorder %s740_s23, 2  ;;  %s490_s27 = sand.u32 1, %s720_s18  }
 0x1e6   : > { %s491_s7 = scalar_lea.sflag [#allocation3], %s490_s27 }
 0x1e7   : > { %p604_p3 = pnand %p607_p2, %p824_p8 }
 0x1e9   : > { %715 = dma.done.wait (!%p604_p3), %s491_s7, 64  }
 0x1ea   : > { %717 = vsyncadd (!%p604_p3), %s491_s7, 4294967232  ;;  %s18_s23 = sadd.s32 1, %s740_s23   ;;  %s931_s18 = smov %s724_s19 }
 0x1eb   : > { %p15_p5 = scmp.ge.s32.totalorder %s18_s23, 4   ;;  %s932_s19 = smov %s728_s20 }
 0x1ec   : > { %s933_s20 = smov %s830_s6  ;;  %s934_s21 = smov %s736_s22 }
 0x1ed   : > { %s935_s22 = smov %s937_s26  ;;  %17 = sbr.rel (!%p15_p5) target bundleno = 4 (0x4), region = 75 }
 0x1f4   :  { %496 = vsyncpa [#allocation3], 1 }
 0x1f5   :  { %498 = vsyncpa [#allocation3 + $0x1], 1 }

</bundles_post_ra>
